<compile_context>
chip_gen: v7x
topology: tpu7x:2x2x1
jax: 0.10.0
libtpu: 0.0.40
codegen_flags: <defaults>
</compile_context>

<pallas_src>
import numpy as np
import jax
import jax.numpy as jnp
from jax import lax
from jax.experimental import pallas as pl
from jax.experimental.pallas import tpu as pltpu


def _round_up(v, m):
    return ((v + m - 1) // m) * m


def _vmem_params():
    """Generation-aware VMEM sizing.

    v5e/v6e have 128 MiB VMEM per TensorCore, v7x has 64 MiB; the scoped
    default leaves most of it idle, so derive the auto-tiler budget and the
    Mosaic limit from the queried capacity (conservative fallback otherwise).
    """
    cap = 64 * 1024 * 1024  # conservative fallback (v7x per-core VMEM)
    try:
        info = pltpu.get_tpu_info()
        queried = getattr(info, "vmem_capacity_bytes", None)
        if queried:
            cap = int(queried)
    except Exception:
        pass
    limit = max(32 * 1024 * 1024, min(int(cap * 0.78), 100 * 1024 * 1024))
    budget = max(20 * 1024 * 1024, min(int(cap * 0.45), 60 * 1024 * 1024))
    return budget, limit


def _step_vmem_bytes(bt, c, tn, in_bytes, cd_bytes):
    io = 4 * bt * c * tn * in_bytes            # double-buffered input + output blocks
    tmp = bt * c * tn * (2 * cd_bytes + 4)     # cast/masked x tile + f32 out tile
    acc = bt * c * c * (8 + cd_bytes)          # f32 energy acc + dot temp + cd attention
    fin = bt * min(c, 256) * c * 8             # row-chunked softmax temporaries
    return io + tmp + acc + fin


def _choose_tiling(b, c, n, in_bytes, cd_bytes, budget):
    """Largest lane-dense N tile that fits the budget (prefer single pass over N,
    then 256-aligned tiles >= 512), plus batch packing that keeps >= 2 batch
    blocks when B >= 2 so the megacore parallel axis stays populated."""
    n_ceil = _round_up(n, 128)
    cands = [n_ceil]                           # single pass: x fetched from HBM once
    t = _round_up(n_ceil // 2, 256)
    while t >= 512:
        if t < n_ceil:
            cands.append(t)
        t = _round_up(t // 2, 256)
    for t in (512, 256, 128):
        if t < n_ceil and t not in cands:
            cands.append(t)
    tn = cands[-1]
    for t in cands:
        if _step_vmem_bytes(1, c, t, in_bytes, cd_bytes) <= budget:
            tn = t
            break

    max_bt = min(b, 8)
    if b >= 2:
        max_bt = max(1, min(max_bt, b // 2))   # keep B // bt >= 2 for 2-core chips
    bt = 1
    for cand in range(max_bt, 0, -1):
        if b % cand == 0 and _step_vmem_bytes(cand, c, tn, in_bytes, cd_bytes) <= budget:
            bt = cand
            break
    return bt, tn


def _make_cam_kernel(compute_dtype, n_total, tn, needs_mask, row_chunk):
    def kernel(gamma_ref, x_ref, o_ref, acc_ref, att_ref):
        phase = pl.program_id(1)
        step = pl.program_id(2)
        last = pl.num_programs(2) - 1

        x_tile = x_ref[...]                      # (bt, C, tn), input dtype
        xc = x_tile.astype(compute_dtype)        # MXU input dtype (bf16 by default)

        @pl.when(phase == 0)
        def _accumulate_and_softmax():
            if needs_mask:
                # Zero the out-of-bounds lanes of the (partial) tail tile so they
                # do not pollute the N-contraction; for full tiles the compare is
                # all-true, for non-padded shapes this branch is compiled out.
                col = step * tn + lax.broadcasted_iota(jnp.int32, xc.shape, 2)
                xe = jnp.where(col < n_total, xc, 0)
            else:
                xe = xc

            # energy tile: contract directly over N (no explicit transpose),
            # f32 accumulation on the MXU.
            e = lax.dot_general(
                xe, xe,
                dimension_numbers=(((2,), (2,)), ((0,), (0,))),
                preferred_element_type=jnp.float32)

            # First tile writes the accumulator directly: no zero-init store and
            # no read of zeros (saves a full C^2 f32 RMW pass per batch block).
            @pl.when(step == 0)
            def _():
                acc_ref[...] = e

            @pl.when(step != 0)
            def _():
                acc_ref[...] += e

            @pl.when(step == last)
            def _finalize():
                # softmax(rowmax(e) - e) == softmax(-e); stable shift = rowmin(e).
                # gamma is folded into the attention ONCE here and the result is
                # cached in compute_dtype, so phase 1 is a pure matmul + residual.
                # Row-chunked to bound the f32 temporaries for large C.
                g = gamma_ref[0]
                c_total = acc_ref.shape[1]
                for r0 in range(0, c_total, row_chunk):
                    rc = min(row_chunk, c_total - r0)
                    energy = acc_ref[:, pl.ds(r0, rc), :]
                    p = jnp.exp(jnp.min(energy, axis=-1, keepdims=True) - energy)
                    denom = jnp.sum(p, axis=-1, keepdims=True)
                    scale = g * pl.reciprocal(denom, approx=False)
                    att_ref[:, pl.ds(r0, rc), :] = (p * scale).astype(att_ref.dtype)

        @pl.when(phase == 1)
        def _emit_output():
            # out_tile = (gamma * attention) @ x_tile + x_tile.
            # Out-of-bounds columns of a partial tail tile produce out-of-bounds
            # output columns, which Pallas drops on the store.
            out = lax.dot_general(
                att_ref[...], xc,
                dimension_numbers=(((2,), (1,)), ((0,), (0,))),
                preferred_element_type=jnp.float32)
            o_ref[...] = (out + x_tile.astype(jnp.float32)).astype(o_ref.dtype)

    return kernel


def cam_forward(x, gamma, *, compute_dtype=jnp.bfloat16, tile_n=None,
                batch_tile=None, donate_input=False):
    """CAM forward. x: (B, C, H, W), gamma: (1,). Returns (B, C, H, W)."""
    B, C, H, W = x.shape
    N = H * W
    in_bytes = x.dtype.itemsize
    cd_bytes = np.dtype(compute_dtype).itemsize
    n_ceil = _round_up(N, 128)

    budget, vmem_limit = _vmem_params()
    auto_bt, auto_tn = _choose_tiling(B, C, N, in_bytes, cd_bytes, budget)
    tn = auto_tn if tile_n is None else max(128, _round_up(min(tile_n, n_ceil), 128))
    bt = auto_bt if batch_tile is None else batch_tile
    if B % bt != 0:
        bt = 1
    nt = pl.cdiv(N, tn)
    needs_mask = (nt * tn != N)                # last N tile is partial

    x3 = x.reshape(B, C, N)                    # no HBM-level pad; no output slice
    row_chunk = min(C, 256)
    kernel = _make_cam_kernel(compute_dtype, N, tn, needs_mask, row_chunk)

    # Advisory cost hint for XLA scheduling around the custom call.
    flops = 4 * B * C * C * N                  # two batched C x N x C matmuls
    bytes_accessed = B * C * N * in_bytes * ((2 if nt > 1 else 1) + 1) + 4
    cost = pl.CostEstimate(flops=int(flops), transcendentals=int(B * C * C),
                           bytes_accessed=int(bytes_accessed))

    call_kwargs = {}
    if donate_input:
        # Input index 1 is x3 (index 0 is the scalar-prefetch gamma); identical
        # shape/dtype to the output so the HBM buffer can be aliased.
        call_kwargs["input_output_aliases"] = {1: 0}

    # TODO(synk): for C << MXU width (e.g. C < 256 on v6e/v7x) a block-packed
    # (bt*C) energy matmul would raise MXU utilization; not implemented here.
    out3 = pl.pallas_call(
        kernel,
        out_shape=jax.ShapeDtypeStruct((B, C, N), x.dtype),
        grid_spec=pltpu.PrefetchScalarGridSpec(
            num_scalar_prefetch=1,                   # gamma lands in SMEM
            grid=(B // bt, 2, nt),                   # (batch blocks, phase, N tiles)
            in_specs=[pl.BlockSpec((bt, C, tn), lambda b, p, s, g: (b, 0, s))],
            # Phase 0 pins the output block index at (b, 0, 0); it is only
            # flushed after phase 1 has written it (p*s == s only when p == 1).
            out_specs=pl.BlockSpec((bt, C, tn), lambda b, p, s, g: (b, 0, p * s)),
            scratch_shapes=[pltpu.VMEM((bt, C, C), jnp.float32),     # energy acc
                            pltpu.VMEM((bt, C, C), compute_dtype)],  # gamma*attention
        ),
        compiler_params=pltpu.CompilerParams(
            dimension_semantics=("parallel", "arbitrary", "arbitrary"),
            vmem_limit_bytes=vmem_limit),
        cost_estimate=cost,
        **call_kwargs,
    )(gamma.astype(jnp.float32).reshape(-1), x3)

    return out3.reshape(B, C, H, W)


def cam_reference(x, gamma, compute_dtype=jnp.float32):
    """Pure-JAX reference matching the PyTorch forward (optionally bf16 MXU inputs)."""
    B, C, H, W = x.shape
    xf = x.reshape(B, C, H * W)
    xc = xf.astype(compute_dtype)
    energy = jnp.einsum('bcn,bdn->bcd', xc, xc,
                        preferred_element_type=jnp.float32,
                        precision=lax.Precision.HIGHEST)
    energy_new = jnp.max(energy, axis=-1, keepdims=True) - energy
    attention = jax.nn.softmax(energy_new, axis=-1)
    out = jnp.einsum('bcd,bdn->bcn', attention.astype(compute_dtype), xc,
                     preferred_element_type=jnp.float32,
                     precision=lax.Precision.HIGHEST)
    out = out.reshape(B, C, H, W)
    return (gamma.astype(jnp.float32).reshape(-1)[0] * out
            + x.astype(jnp.float32)).astype(x.dtype)


if __name__ == "__main__":
    key = jax.random.PRNGKey(0)
    B, C, H, W = 2, 4, 16, 16
    x = 0.5 * jax.random.normal(key, (B, C, H, W), dtype=jnp.float32)

    # 1) PyTorch init (gamma = zeros(1)), default bf16 MXU path: out must equal x.
    gamma0 = jnp.zeros((1,), dtype=jnp.float32)
    out0 = jax.block_until_ready(cam_forward(x, gamma0))
    assert out0.shape == (B, C, H, W)
    assert jnp.allclose(out0, x, atol=1e-6), "gamma=0 residual path mismatch"

    # 2) Non-zero gamma, full-f32 MXU path vs f32 reference (algorithm check).
    gamma = jnp.array([0.9], dtype=jnp.float32)
    out_f32 = jax.block_until_ready(cam_forward(x, gamma, compute_dtype=jnp.float32))
    ref_f32 = cam_reference(x, gamma, compute_dtype=jnp.float32)
    assert jnp.allclose(out_f32, ref_f32, atol=1e-4, rtol=1e-4), "f32 path mismatch"

    # 3) Multi-tile path with a partial, in-kernel masked tail tile
    #    (N=196, tn=128 -> tiles of 128 and 68 valid lanes), f32 check.
    B2, C2, H2, W2 = 2, 16, 14, 14
    x2 = 0.5 * jax.random.normal(jax.random.PRNGKey(1), (B2, C2, H2, W2), jnp.float32)
    out_t = jax.block_until_ready(
        cam_forward(x2, gamma, compute_dtype=jnp.float32, tile_n=128, batch_tile=1))
    ref_t = cam_reference(x2, gamma, compute_dtype=jnp.float32)
    assert jnp.allclose(out_t, ref_t, atol=1e-4, rtol=1e-4), "tiled path mismatch"

    # 4) Auto-tiled single-pass path on the same non-multiple-of-128 shape
    #    (tn=256 covers N=196 via masking), default bf16 MXU inputs.
    out_bf = jax.block_until_ready(cam_forward(x2, gamma))
    ref_bf = cam_reference(x2, gamma, compute_dtype=jnp.bfloat16)
    assert jnp.allclose(out_bf, ref_bf, atol=2e-2, rtol=2e-2), "bf16 path mismatch"

    print("KERNEL_OK")
</pallas_src>

<mosaic_0001>
module attributes {stable_mosaic.version = 11 : i64} {
  func.func @kernel(%arg0: i32, %arg1: i32, %arg2: i32, %arg3: memref<1xf32, #tpu.memory_space<smem>>, %arg4: memref<1x4x256xf32, #tpu.memory_space<vmem>>, %arg5: memref<1x4x256xf32, #tpu.memory_space<vmem>>, %arg6: memref<1x4x4xf32, #tpu.memory_space<vmem>>, %arg7: memref<1x4x4xbf16, #tpu.memory_space<vmem>>) attributes {dimension_semantics = [#tpu.dimension_semantics<parallel>, #tpu.dimension_semantics<arbitrary>, #tpu.dimension_semantics<arbitrary>], iteration_bounds = array<i64: 2, 2, 1>, scalar_prefetch = 1 : i64, scratch_operands = 2 : i64, tpu.core_type = #tpu.core_type<tc>, window_params = [{transform_indices = @transform_0, window_bounds = array<i64: 1, 4, 256>}, {transform_indices = @transform_1, window_bounds = array<i64: 1, 4, 256>}]} {
    %c0 = arith.constant 0 : index
    %c0_0 = arith.constant 0 : index
    %c0_1 = arith.constant 0 : index
    %0 = vector.load %arg4[%c0, %c0_0, %c0_1] : memref<1x4x256xf32, #tpu.memory_space<vmem>>, vector<1x4x256xf32>
    %1 = arith.truncf %0 : vector<1x4x256xf32> to vector<1x4x256xbf16>
    %c0_i32 = arith.constant 0 : i32
    %2 = arith.cmpi eq, %arg1, %c0_i32 : i32
    %3 = arith.extui %2 : i1 to i32
    %c0_i32_2 = arith.constant 0 : i32
    %4 = arith.cmpi ne, %3, %c0_i32_2 : i32
    scf.if %4 {
      %cst = arith.constant dense<0.000000e+00> : vector<1x4x4xf32>
      %8 = tpu.matmul %1, %1, %cst {dimension_numbers = #tpu.dot_dimension_numbers<[2], [2], [1], [1], [0, 0, 0, 1, 1, 1], [0], [0]>} : vector<1x4x256xbf16>, vector<1x4x256xbf16>, vector<1x4x4xf32> -> vector<1x4x4xf32>
      %c0_i32_4 = arith.constant 0 : i32
      %9 = arith.cmpi eq, %arg2, %c0_i32_4 : i32
      %10 = arith.extui %9 : i1 to i32
      %c0_i32_5 = arith.constant 0 : i32
      %11 = arith.cmpi ne, %10, %c0_i32_5 : i32
      scf.if %11 {
        %c0_10 = arith.constant 0 : index
        %c0_11 = arith.constant 0 : index
        %c0_12 = arith.constant 0 : index
        %18 = vector.load %arg6[%c0_10, %c0_11, %c0_12] : memref<1x4x4xf32, #tpu.memory_space<vmem>>, vector<1x4x4xf32>
        tpu.vector_store %arg6[%c0_10, %c0_11, %c0_12], %8 {strides = array<i32>} : memref<1x4x4xf32, #tpu.memory_space<vmem>>, vector<1x4x4xf32>,
      } else {
      }
      %c0_i32_6 = arith.constant 0 : i32
      %12 = arith.cmpi ne, %arg2, %c0_i32_6 : i32
      %13 = arith.extui %12 : i1 to i32
      %c0_i32_7 = arith.constant 0 : i32
      %14 = arith.cmpi ne, %13, %c0_i32_7 : i32
      scf.if %14 {
        %c0_10 = arith.constant 0 : index
        %c0_11 = arith.constant 0 : index
        %c0_12 = arith.constant 0 : index
        %18 = vector.load %arg6[%c0_10, %c0_11, %c0_12] : memref<1x4x4xf32, #tpu.memory_space<vmem>>, vector<1x4x4xf32>
        %19 = arith.addf %18, %8 : vector<1x4x4xf32>
        %c0_13 = arith.constant 0 : index
        %c0_14 = arith.constant 0 : index
        %c0_15 = arith.constant 0 : index
        %20 = vector.load %arg6[%c0_13, %c0_14, %c0_15] : memref<1x4x4xf32, #tpu.memory_space<vmem>>, vector<1x4x4xf32>
        tpu.vector_store %arg6[%c0_13, %c0_14, %c0_15], %19 {strides = array<i32>} : memref<1x4x4xf32, #tpu.memory_space<vmem>>, vector<1x4x4xf32>,
      } else {
      }
      %c0_i32_8 = arith.constant 0 : i32
      %15 = arith.cmpi eq, %arg2, %c0_i32_8 : i32
      %16 = arith.extui %15 : i1 to i32
      %c0_i32_9 = arith.constant 0 : i32
      %17 = arith.cmpi ne, %16, %c0_i32_9 : i32
      scf.if %17 {
        %c0_10 = arith.constant 0 : index
        %18 = memref.load %arg3[%c0_10] : memref<1xf32, #tpu.memory_space<smem>>
        %c0_11 = arith.constant 0 : index
        %c0_12 = arith.constant 0 : index
        %c0_13 = arith.constant 0 : index
        %19 = vector.load %arg6[%c0_11, %c0_12, %c0_13] : memref<1x4x4xf32, #tpu.memory_space<vmem>>, vector<1x4x4xf32>
        %cst_14 = arith.constant dense<0x7F800000> : vector<1x4xf32>
        %20 = vector.multi_reduction <minimumf>, %19, %cst_14 [2] : vector<1x4x4xf32> to vector<1x4xf32>
        %21 = vector.shape_cast %20 : vector<1x4xf32> to vector<1x4x1xf32>
        %22 = vector.broadcast %21 : vector<1x4x1xf32> to vector<1x4x4xf32>
        %23 = arith.subf %22, %19 : vector<1x4x4xf32>
        %24 = math.exp %23 : vector<1x4x4xf32>
        %cst_15 = arith.constant dense<0.000000e+00> : vector<1x4xf32>
        %25 = vector.multi_reduction <add>, %24, %cst_15 [2] : vector<1x4x4xf32> to vector<1x4xf32>
        %26 = vector.shape_cast %25 : vector<1x4xf32> to vector<1x4x1xf32>
        %27 = tpu.reciprocal %26 : vector<1x4x1xf32> -> vector<1x4x1xf32>
        %28 = vector.broadcast %18 : f32 to vector<1x4x1xf32>
        %29 = arith.mulf %28, %27 : vector<1x4x1xf32>
        %30 = vector.broadcast %29 : vector<1x4x1xf32> to vector<1x4x4xf32>
        %31 = arith.mulf %24, %30 : vector<1x4x4xf32>
        %32 = arith.truncf %31 : vector<1x4x4xf32> to vector<1x4x4xbf16>
        %c0_16 = arith.constant 0 : index
        %c0_17 = arith.constant 0 : index
        %c0_18 = arith.constant 0 : index
        %33 = vector.load %arg7[%c0_16, %c0_17, %c0_18] : memref<1x4x4xbf16, #tpu.memory_space<vmem>>, vector<1x4x4xbf16>
        tpu.vector_store %arg7[%c0_16, %c0_17, %c0_18], %32 {strides = array<i32>} : memref<1x4x4xbf16, #tpu.memory_space<vmem>>, vector<1x4x4xbf16>,
      } else {
      }
    } else {
    }
    %c1_i32 = arith.constant 1 : i32
    %5 = arith.cmpi eq, %arg1, %c1_i32 : i32
    %6 = arith.extui %5 : i1 to i32
    %c0_i32_3 = arith.constant 0 : i32
    %7 = arith.cmpi ne, %6, %c0_i32_3 : i32
    scf.if %7 {
      %c0_4 = arith.constant 0 : index
      %c0_5 = arith.constant 0 : index
      %c0_6 = arith.constant 0 : index
      %8 = vector.load %arg7[%c0_4, %c0_5, %c0_6] : memref<1x4x4xbf16, #tpu.memory_space<vmem>>, vector<1x4x4xbf16>
      %cst = arith.constant dense<0.000000e+00> : vector<1x4x256xf32>
      %9 = tpu.matmul %8, %1, %cst {dimension_numbers = #tpu.dot_dimension_numbers<[2], [1], [1], [2], [0, 0, 0, 1, 1, 2], [0], [0]>} : vector<1x4x4xbf16>, vector<1x4x256xbf16>, vector<1x4x256xf32> -> vector<1x4x256xf32>
      %10 = arith.addf %9, %0 : vector<1x4x256xf32>
      %c0_7 = arith.constant 0 : index
      %c0_8 = arith.constant 0 : index
      %c0_9 = arith.constant 0 : index
      %11 = vector.load %arg5[%c0_7, %c0_8, %c0_9] : memref<1x4x256xf32, #tpu.memory_space<vmem>>, vector<1x4x256xf32>
      tpu.vector_store %arg5[%c0_7, %c0_8, %c0_9], %10 {strides = array<i32>} : memref<1x4x256xf32, #tpu.memory_space<vmem>>, vector<1x4x256xf32>,
    } else {
    }
    return
  }
  func.func @transform_0(%arg0: i32, %arg1: i32, %arg2: i32, %arg3: memref<1xf32, #tpu.memory_space<smem>>) -> (i32, i32, i32) {
    %c0_i32 = arith.constant 0 : i32
    %c0_i32_0 = arith.constant 0 : i32
    return %arg0, %c0_i32, %arg2 : i32, i32, i32
  }
  func.func @transform_1(%arg0: i32, %arg1: i32, %arg2: i32, %arg3: memref<1xf32, #tpu.memory_space<smem>>) -> (i32, i32, i32) {
    %0 = arith.muli %arg1, %arg2 : i32
    %c0_i32 = arith.constant 0 : i32
    %c0_i32_0 = arith.constant 0 : i32
    return %arg0, %c0_i32, %0 : i32, i32, i32
  }
}

</mosaic_0001>

<bundles_post_ra>
// kernel: tpu_custom_call.1
= control target key start
LH: loop header
LB: loop body
LE: loop exit
PB: predicated region body
PF: predicated region fallthrough
CT: control target
= control target key end

     0   :  { %s868_s0 = inlined_call_operand.<no memory space> [shape: f32[1], index: 0, kind: input, shape index: {}]   ;;  %s869_s1 = inlined_call_operand.hbm [shape: f32[2,4,256], index: 1, kind: input, shape index: {}]   ;;  %s870_s2 = inlined_call_operand.hbm [shape: f32[2,4,256], index: 2, kind: output, shape index: {}]  }
   0x1   :  { %7 = sst [smem:[#allocation5]] %s868_s0 }
   0x2   :  { %8 = vsyncpa [#allocation7], 0 }
   0x3   :  { %10 = vsyncpa [#allocation7 + $0x1], 0 }
   0x4   :  { %11 = vsyncpa [#allocation8], 0 }
   0x5   :  { %13 = vsyncpa [#allocation8 + $0x1], 0  ;;  %s678_s11 = smov 0   ;;  %s680_s12 = smov 0  }
   0x6   :  { %s682_s13 = smov 0   ;;  %s684_s14 = smov 0  }
   0x7   :  { %s686_s15 = smov 0   ;;  %s688_s16 = smov 0  }
   0x8   :  { %s690_s17 = smov 0   ;;  %s692_s18 = smov 0  }
   0x9 LB: > { %s422_s0 = sadd.s32 4294967295, %s655_s18   ;;  %s423_s19 = sadd.s32 4294967294, %s655_s18   ;;  %s655_s18 = sphi %s692_s18, %s19_s18   ;;  %s651_s17 = sphi %s690_s17, %s887_s17   ;;  %s647_s16 = sphi %s688_s16, %s886_s16   ;;  %s643_s15 = sphi %s686_s15, %s885_s15   ;;  %s639_s14 = sphi %s684_s14, %s884_s14   ;;  %s635_s13 = sphi %s682_s13, %s883_s13   ;;  %s631_s12 = sphi %s680_s12, %s882_s12   ;;  %s627_s11 = sphi %s678_s11, %s881_s11  }
   0xa   : > { %s34_s20 = sadd.s32 1, %s647_s16  ;;  %s38_s21 = sadd.s32 1, %s651_s17 }
   0xb   : > { %p36_p0 = scmp.ge.s32.totalorder %s34_s20, 2  ;;  %s47_s22 = sadd.s32 1, %s635_s13 }
   0xc   : > { %p54_p1 = scmp.ne.s32.totalorder %s635_s13, %s631_s12  ;;  %p55_p2 = scmp.eq.s32.totalorder %s655_s18, 0 }
   0xd   : > { %s889_s20 = smov (%p36_p0, %s34_s20), 0  ;;  %s891_s21 = smov (!%p36_p0, %s38_s21), %s651_s17 }
   0xe   : > { %p729_p3 = por %p55_p2, %p54_p1  ;;  %p60_p4 = scmp.ne.s32.totalorder %s631_s12, %s627_s11 }
   0xf   : > { %p40_p5 = scmp.ge.s32.totalorder %s891_s21, 2  ;;  %p61_p6 = scmp.eq.s32.totalorder %s422_s0, 0 }
  0x10   : > { %p88_p7 = scmp.eq.s32.totalorder %s422_s0, 3  ;;  %p94_p8 = scmp.eq.s32.totalorder %s423_s19, 3 }
  0x11   : > { %s893_s21 = smov (%p40_p5, %s891_s21), 0  ;;  %p737_p9 = por %p61_p6, %p60_p4 }
  0x12   : > { %p741_p10 = por %p88_p7, %p54_p1  ;;  %s42_s26 = ssub.s32 %s651_s17, %s893_s21 }
  0x13   : > { %p747_p11 = por %p94_p8, %p60_p4  ;;  %p45_p12 = scmp.eq.s32.totalorder %s42_s26, 0 }
  0x14   : > { %s874_s25 = scalar_select %p741_p10, 1, 0 }
  0x15   : > { %s875_s27 = scalar_select %p747_p11, 1, 0 }
  0x16   : > { %p455_p13 = scmp.lt.s32.totalorder %s655_s18, 4  ;;  %s114_s28 = sand.u32 1, %s635_s13  }
  0x17   : > { %s754_s29 = scalar_select %p45_p12, %s635_s13, %s47_s22  }
  0x18   : > { %s426_s30 = sshll.u32 %s114_s28, 3  ;;  %s441_s3 = sshll.u32 %s651_s17, 7 }
  0x19   : > { %s760_s6 = scalar_lea.hbm %s869_s1, %s441_s3  ;;  %s118_s7 = scalar_lea.vmem [#allocation6], %s426_s30 }
  0x1a   : > { %s128_s8 = sshll.u32 %s118_s7, 4  ;;  %p766_p0 = pnand %p455_p13, %p729_p3  ;;  %s762_s8 = int_to_ptr.vmem [resolvable:$true] %s128_s8 }
  0x1b   : > { %s115_s10 = scalar_lea.sflag [#allocation7], %s114_s28  ;;  %s527_s0 = scalar_lea.hbm %s760_s6, 128 }
  0x1c   : > { %p528_p4 = scmp.ne.s32.totalorder %s760_s6, %s527_s0  ;;  %p529_p5 = pneg %p766_p0 }
  0x1d   : > { %s532_s23 = scalar_lea.hbm %s869_s1, 256  ;;  %p533_p3 = scmp.lt.u32.totalorder %s760_s6, %s869_s1 }
  0x1e   : > { %p530_p6 = pnand %p529_p5, %p528_p4  ;;  %p534_p8 = scmp.lt.u32.totalorder %s532_s23, %s527_s0 }
  0x1f   : > { %p536_p13 = scmp.lt.u32.totalorder %s527_s0, %s760_s6 }
  0x20   : > { %p531_p7 = pneg %p530_p6  ;;  %p535_p12 = por %p534_p8, %p533_p3 }
  0x22   : > { %p537_p1 = por %p536_p13, %p535_p12 }
  0x24   : > { %p538_p2 = pnand %p537_p1, %p531_p7 }
  0x26   : > { %541 = shalt.err (!%p538_p2)
}
  0x27   : > { %s542_s28 = scalar_lea.vmem %s762_s8, 128  ;;  %s657_s3 = smov [#allocation6]  }
  0x28   : > { %p543_p4 = scmp.ne.s32.totalorder %s762_s8, %s542_s28  ;;  %s547_s4 = sshll.u32 %s657_s3, 4  ;;  %s548_s4 = int_to_ptr.vmem [resolvable:$false] %s547_s4 }
  0x29   : > { %s549_s5 = scalar_lea.vmem %s548_s4, 256  ;;  %p550_p10 = scmp.lt.s32.totalorder %s762_s8, %s548_s4 }
  0x2a   : > { %p545_p6 = pnand %p543_p4, %p529_p5  ;;  %p551_p3 = scmp.lt.s32.totalorder %s549_s5, %s542_s28 }
  0x2c   : > { %p546_p11 = pneg %p545_p6  ;;  %p552_p8 = por %p551_p3, %p550_p10 }
  0x2e   : > { %p553_p12 = pnand %p552_p8, %p546_p11 }
  0x30   : > { %556 = shalt.err (!%p553_p12)
}
  0x31   : > { %450 = dma.hbm_to_vmem [thread:$0]  (!%p766_p0), %s760_s6, 128, %s762_s8, %s115_s10  }
  0x32   : > { %p877_p1 = scmp.lt.s32.totalorder %s655_s18, 5  ;;  %p878_p2 = scmp.ge.s32.totalorder %s655_s18, 1 }
  0x34   : > { %p134_p5 = pnand %p878_p2, %p877_p1 }
  0x35   : > { %s802_s7 = sand.u32 (!%p134_p5), 1, %s631_s12  }
  0x36   : > { %137 = sbr.rel (%p134_p5) target bundleno = 864 (0x360), region = 24  ;;  %s430_s0 = sshll.u32 (!%p134_p5), %s802_s7, 3 }
  0x37   : > { %s140_s19 = scalar_lea.sflag (!%p134_p5), [#allocation7], %s802_s7  ;;  %s143_s22 = scalar_lea.vmem (!%p134_p5), [#allocation6], %s430_s0 }
  0x3d   : > { %618 = dma.done.wait (%p737_p9), %s140_s19, 128  }
  0x3e   : > { %620 = vsyncadd (%p737_p9), %s140_s19, 4294967168  ;;  %v166_v0 = vld [vmem:[%s143_s22] sm:$0xff]  ;;  %s810_s6 = scalar_lea.vmem [#allocation9], %s430_s0  ;;  %p432_p10 = scmp.ne.s32.totalorder %s639_s14, 0 }
  0x3f   : > { %v168_v1 = vcombine.high %v166_v0, %v166_v0  ;;  %v170_v2 = vpack.c.bf16 %v166_v0, %v166_v0  ;;  %vm220_vm0 = vcmask (!%p432_p10), 27648   ;;  %s233_s24 = sld [smem:[#allocation5]] (!%p432_p10)  ;;  %vm250_vm1 = vcmask (!%p432_p10), 25600  }
  0x40   : > { %175 = sbr.rel (%p432_p10) target bundleno = 614 (0x266), region = 32 }
  0x41   : > { %v171_v3 = vpack.c.bf16 %v168_v1, %v168_v1 }
  0x43   : > { %176 = vmatprep.subr.bf16.mxu0 (!%p432_p10), %v171_v3  ;;  %208 = vmatprep.mubr.bf16.mxu0 (!%p432_p10), %v171_v3 }
  0x44   : > { %177 = vmatpush1.bf16.xpose.msra.mxu0 (!%p432_p10), %v170_v2 }
  0x45   : > { %v246_v16 = vstv (!%p432_p10), %s233_s24 }
  0x4b   : > { %209 = vmatmul.mubr.bf16.vlgmr.msra.gmra.mrb[0].mxu0 %v170_v2 }
 0x11e   : > { %v210_v4 = vpop.f32.mrb[0].mxu0 }
 0x11f   : > { %221 = vst.msk [vmem:[#allocation2] sm:$0xf] %vm220_vm0, %v210_v4  ;;  %v212_v5 = vpop.f32.mrb[1].mxu0 }
 0x120   : > { %v213_v6 = vpop.f32.mrb[2].mxu0 }
 0x121   : > { %v214_v7 = vpop.f32.mrb[3].mxu0 }
 0x126   : > { %v234_v8 = vld [vmem:[#allocation2] sm:$0xf] }
 0x127   : > { %v236_v9 = vsel %vm220_vm0, %v234_v8, inf }
 0x128   : > { %237 = vmin.xlane.f32.xlu0 %v236_v9 }
 0x1b5   : > { %v238_v10 = vpop.xlane.xlu0 %237 }
 0x1b6   : > { %v239_v11 = vsub.f32 %v238_v10, %v234_v8 }
 0x1b8   : > { %v240_v12 = vmul.f32 1.442695, %v239_v11 }
 0x1ba   : > { %523 = vpow2.f32 %v240_v12 }
 0x1c4   : > { %v524_v13 = vpop.eup %523 }
 0x1c5   : > { %v242_v14 = vsel %vm220_vm0, %v524_v13, 0.0 }
 0x1c6   : > { %243 = vadd.xlane.f32.xlu0 %v242_v14 }
 0x253   : > { %v244_v15 = vpop.xlane.xlu0 %243 }
 0x254   : > { %525 = vrcp.f32 %v244_v15 }
 0x25e   : > { %v526_v17 = vpop.eup %525 }
 0x25f   : > { %v247_v18 = vmul.f32 %v526_v17, %v246_v16 }
 0x261   : > { %v248_v19 = vmul.f32 %v524_v13, %v247_v18 }
 0x263   : > { %v249_v20 = vpack.c.bf16 %v248_v19, %v248_v19 }
 0x265   : > { %251 = vst.msk [vmem:[#allocation3] sm:$0x3] %vm250_vm1, %v249_v20 }
 0x266 PF: > { %p433_p9 = scmp.ne.s32.totalorder %s639_s14, 1 }
 0x267   : > { %vm261_vm2 = vcmask (!%p433_p9), 1041408   ;;  %v658_v22 = vmov (!%p433_p9), 0   ;;  %vm257_vm3 = vcmask (!%p433_p9), 31744  }
 0x268   : > { %255 = sbr.rel (%p433_p9) target bundleno = 839 (0x347), region = 48  ;;  %434 = vmatprep.subr.msk.bf16.mxu0 (!%p433_p9), %vm261_vm2, %v171_v3  ;;  %v263_v21 = vsel (!%p433_p9), %vm261_vm2, %v170_v2, 0  ;;  %300 = vmatprep.mubr.bf16.mxu0 (!%p433_p9), %v658_v22 }
 0x269   : > { %269 = vmatpush1.bf16.msra.mxu0 (!%p433_p9), %v263_v21 }
 0x26c   : > { %v256_v23 = vld [vmem:[#allocation3] sm:$0x3] (!%p433_p9) }
 0x26d   : > { %435 = vmatmul.mubr.msk.bf16.vlgmr.msra.gmra.mrb[0].mxu0 (!%p433_p9), %vm257_vm3, %v256_v23 }
 0x340   : > { %v302_v24 = vpop.f32.mrb[0].mxu0 }
 0x341   : > { %v303_v25 = vadd.f32 %v302_v24, %v166_v0  ;;  %v304_v26 = vpop.f32.mrb[1].mxu0 }
 0x342   : > { %v305_v27 = vadd.f32 %v304_v26, %v168_v1  ;;  %v306_v28 = vpop.f32.mrb[2].mxu0 }
 0x343   : > { %v307_v29 = vpop.f32.mrb[3].mxu0 }
 0x344   : > { %v311_v30 = vcombine.low %v303_v25, %v305_v27 }
 0x346   : > { %313 = vst [vmem:[%s810_s6] sm:$0xff] %v311_v30 }
 0x347 PF: > { %s442_s14 = sshll.u32 %s643_s15, 7  ;;  %s332_s23 = sshll.u32 %s810_s6, 4  ;;  %s333_s23 = int_to_ptr.vmem [resolvable:$true] %s332_s23 }
 0x348   : > { %s819_s10 = scalar_lea.hbm %s870_s2, %s442_s14  ;;  %s315_s26 = scalar_lea.sflag [#allocation8], %s802_s7 }
 0x349   : > { %s557_s30 = scalar_lea.vmem %s333_s23, 128  ;;  %p879_p0 = scmp.ne.s32.totalorder %s874_s25, 0 }
 0x34a   : > { %p558_p11 = scmp.ne.s32.totalorder %s333_s23, %s557_s30  ;;  %s659_s28 = smov [#allocation9]  }
 0x34b   : > { %s561_s3 = sshll.u32 %s659_s28, 4  ;;  %s562_s3 = int_to_ptr.vmem [resolvable:$false] %s561_s3 }
 0x34c   : > { %p559_p7 = pnand %p558_p11, %p879_p0  ;;  %s563_s4 = scalar_lea.vmem %s562_s3, 256 }
 0x34d   : > { %p564_p4 = scmp.lt.s32.totalorder %s333_s23, %s562_s3  ;;  %p565_p6 = scmp.lt.s32.totalorder %s563_s4, %s557_s30 }
 0x34e   : > { %p560_p13 = pneg %p559_p7 }
 0x34f   : > { %p566_p3 = por %p565_p6, %p564_p4 }
 0x351   : > { %p567_p8 = pnand %p566_p3, %p560_p13 }
 0x353   : > { %570 = shalt.err (!%p567_p8)
}
 0x354   : > { %s571_s15 = scalar_lea.hbm %s819_s10, 128  ;;  %s575_s0 = scalar_lea.hbm %s870_s2, 256 }
 0x355   : > { %p572_p12 = scmp.ne.s32.totalorder %s819_s10, %s571_s15  ;;  %p576_p5 = scmp.lt.u32.totalorder %s819_s10, %s870_s2 }
 0x356   : > { %p577_p10 = scmp.lt.u32.totalorder %s575_s0, %s571_s15  ;;  %p579_p11 = scmp.lt.u32.totalorder %s571_s15, %s819_s10 }
 0x357   : > { %p573_p1 = pnand %p572_p12, %p879_p0 }
 0x358   : > { %p578_p9 = por %p577_p10, %p576_p5 }
 0x359   : > { %p574_p2 = pneg %p573_p1 }
 0x35a   : > { %p580_p7 = por %p579_p11, %p578_p9 }
 0x35c   : > { %p581_p13 = pnand %p580_p7, %p574_p2 }
 0x35e   : > { %584 = shalt.err (!%p581_p13)
}
 0x35f   : > { %445 = dma.vmem_to_hbm [thread:$0]  (%p879_p0), %s333_s23, 128, %s819_s10, %s315_s26  }
 0x360 PF: > { %p456_p4 = scmp.ge.s32.totalorder %s655_s18, 2  ;;  %s344_s6 = sand.u32 1, %s627_s11  }
 0x361   : > { %p880_p6 = scmp.ne.s32.totalorder %s875_s27, 0  ;;  %s345_s24 = scalar_lea.sflag [#allocation8], %s344_s6 }
 0x363   : > { %p452_p3 = pnand %p456_p4, %p880_p6 }
 0x365   : > { %622 = dma.done.wait (!%p452_p3), %s345_s24, 128  }
 0x366   : > { %624 = vsyncadd (!%p452_p3), %s345_s24, 4294967168  ;;  %s19_s18 = sadd.s32 1, %s655_s18   ;;  %s881_s11 = smov %s631_s12 }
 0x367   : > { %p16_p8 = scmp.ge.s32.totalorder %s19_s18, 6   ;;  %s882_s12 = smov %s635_s13 }
 0x368   : > { %s883_s13 = smov %s754_s29  ;;  %s884_s14 = smov %s647_s16 }
 0x369   : > { %s885_s15 = smov %s651_s17  ;;  %s886_s16 = smov %s889_s20 }
 0x36a   : > { %s887_s17 = smov %s893_s21  ;;  %18 = sbr.rel (!%p16_p8) target bundleno = 9 (0x9), region = 89 }
 0x371   :  { %350 = vsyncpa [#allocation7], 1 }
 0x372   :  { %352 = vsyncpa [#allocation7 + $0x1], 1 }
 0x373   :  { %353 = vsyncpa [#allocation8], 1 }
 0x374   :  { %355 = vsyncpa [#allocation8 + $0x1], 1 }

</bundles_post_ra>
